<compile_context>
chip_gen: v7x
topology: tpu7x:2x2x1
jax: 0.10.0
libtpu: 0.0.40
codegen_flags: <defaults>
</compile_context>

<pallas_src>
import functools
import math

import numpy as np

import jax
import jax.numpy as jnp
from jax.experimental import pallas as pl
from jax.experimental.pallas import tpu as pltpu


_INV_SQRT_2PI = 1.0 / math.sqrt(2.0 * math.pi)
_NEG = -1.0e30  # finite "-inf" for masked logits lanes (avoids 0 * inf = NaN)


def _guided_attention_l1_kernel(packed_ref, flat_ref, out_ref, *,
                                C, Lmax, offsets, beta, inv_min_std, inv_max_std):
    packed = packed_ref[...]                                   # (B, W) f32
    B, W = packed.shape

    lane = jax.lax.broadcasted_iota(jnp.int32, (B, W), 1)      # (B, W)
    pos = jax.lax.broadcasted_iota(jnp.int32, (B, Lmax), 1)    # (B, Lmax)

    # --- unpack per-row scalar columns (masked reduce: no unaligned value slices) ---
    def col(c):
        return jnp.sum(jnp.where(lane == c, packed, 0.0), axis=-1, keepdims=True)

    labels_f = col(C)                                          # (B, 1)
    pen_col = col(C + 1)                                       # (B, 1) all rows equal
    len_f = col(C + 2)                                         # (B, 1)
    inv_len = col(C + 3)                                       # (B, 1) exact 1/length (host const)

    # --- cross-entropy (mean reduction, matches torch.nn.CrossEntropyLoss) ----------
    logits_m = jnp.where(lane < C, packed, _NEG)               # lane-dense (B, W)
    row_max = jnp.max(logits_m, axis=-1, keepdims=True)
    shifted = logits_m - row_max
    lse = jnp.log(jnp.sum(jnp.exp(shifted), axis=-1, keepdims=True))     # (B, 1)
    onehot = (lane.astype(jnp.float32) == labels_f).astype(jnp.float32)  # label < C
    picked = jnp.sum(onehot * shifted, axis=-1, keepdims=True)           # (B, 1)
    nll = jnp.mean(lse - picked)                                         # scalar

    # --- assemble (B, Lmax) attention rows from the flat buffer ---------------------
    # offsets are static python ints -> B static lane-offset slices, no gather.
    rows = [flat_ref[:, off:off + Lmax] for off in offsets]    # B x (1, Lmax)
    attn_raw = jnp.concatenate(rows, axis=0)                   # (B, Lmax)

    pos_f = pos.astype(jnp.float32)
    valid = pos_f < len_f                                      # (B, Lmax)
    attn = jnp.where(valid, attn_raw, 0.0)                     # zero outside own segment

    x = (pos_f + 1.0) * inv_len                                # get_x: (i+1)/len

    sum_y = jnp.sum(attn, axis=-1, keepdims=True)              # (B, 1)
    # NOTE: like the torch reference (calc_mean), no epsilon here; sum_y == 0 -> NaN.
    mean = jnp.sum(x * attn, axis=-1, keepdims=True) / sum_y   # (B, 1)

    # 1/ideal_std with ideal_std = {min,max}_std / length (divides folded into consts)
    inv_std = jnp.where(labels_f == 1.0,
                        len_f * inv_min_std,
                        len_f * inv_max_std)                   # (B, 1)

    # TODO(synk): utils.normal_pdf is assumed to be the standard Gaussian pdf
    #             1/(std*sqrt(2*pi)) * exp(-0.5*((x-mean)/std)^2).
    coeff = inv_std * _INV_SQRT_2PI                            # (B, 1)
    z = (x - mean) * inv_std
    r_hat = jnp.where(valid, coeff * jnp.exp(-0.5 * z * z), 0.0)          # (B, Lmax)
    # exact divide kept for parity with torch (one (B,1) reciprocal + broadcast mul)
    r = r_hat * (1.0 / (jnp.sum(r_hat, axis=-1, keepdims=True) + 1e-6))   # (B, Lmax)

    diff = attn - r                                            # 0 at padded positions
    mse_per_seg = jnp.sum(diff * diff, axis=-1, keepdims=True) * inv_len  # (B, 1)
    attn_penalty = (beta * 0.5) * jnp.mean(mse_per_seg)

    penalty = jnp.mean(pen_col)                                # == alpha/2 * sum|params|

    out_ref[0, 0] = nll + penalty + attn_penalty
    out_ref[0, 1] = nll


def _round_up(n, m):
    return ((n + m - 1) // m) * m


@functools.lru_cache(maxsize=None)
def _build_loss_fn(lengths, C, alpha, beta, min_std, max_std):
    lengths_np = np.asarray(lengths, dtype=np.int64)
    B = int(lengths_np.shape[0])
    assert np.all(lengths_np > 0), "every attention segment must be non-empty"
    offsets = tuple(int(o) for o in np.concatenate(([0], np.cumsum(lengths_np)[:-1])))

    Lmax = max(128, _round_up(int(lengths_np.max()), 128))         # static lane width
    total_pad = _round_up(offsets[-1] + Lmax, 128)                 # keeps all slices in-bounds
    W = max(128, _round_up(C + 4, 128))                            # logits + 4 aux lanes

    # Static per-row constants ride in the packed tile (no separate lengths input).
    length_col = jnp.asarray(lengths_np.astype(np.float32)).reshape(B, 1)
    inv_len_col = jnp.asarray((1.0 / lengths_np.astype(np.float64)).astype(np.float32)
                              ).reshape(B, 1)

    kernel = functools.partial(
        _guided_attention_l1_kernel,
        C=int(C), Lmax=Lmax, offsets=offsets, beta=float(beta),
        inv_min_std=1.0 / float(min_std), inv_max_std=1.0 / float(max_std))

    vmem = pltpu.MemorySpace.VMEM
    smem = pltpu.MemorySpace.SMEM
    cost = pl.CostEstimate(                                        # advisory only
        flops=40 * B * Lmax + 20 * B * W,
        transcendentals=B * (Lmax + W),
        bytes_accessed=4 * (B * W + total_pad + 2))

    call = pl.pallas_call(
        kernel,
        out_shape=jax.ShapeDtypeStruct((1, 2), jnp.float32),
        in_specs=[pl.BlockSpec(memory_space=vmem),     # packed (B, W)
                  pl.BlockSpec(memory_space=vmem)],    # flat   (1, Tpad)
        out_specs=pl.BlockSpec(memory_space=smem),     # (1, 2) scalars
        cost_estimate=cost,
    )

    @jax.jit
    def run(logits, labels, attention_weights_flat, params):
        # L1 penalty in plain XLA: keeps a model-sized params vector out of VMEM
        # (v7x: 64 MiB physical / 32 MiB scoped; v5e: 16 MiB scoped).
        penalty = (float(alpha) * 0.5) * jnp.sum(jnp.abs(params.astype(jnp.float32)))

        packed = jnp.concatenate(
            [logits.astype(jnp.float32),
             labels.astype(jnp.float32).reshape(B, 1),
             jnp.broadcast_to(penalty, (B, 1)),
             length_col,
             inv_len_col,
             jnp.zeros((B, W - C - 4), jnp.float32)],
            axis=1)                                                # (B, W)

        flat = attention_weights_flat.astype(jnp.float32)
        flat = jnp.pad(flat, (0, total_pad - flat.shape[0])).reshape(1, total_pad)

        out = call(packed, flat)
        return {"loss": out[0, 0], "nll": out[0, 1]}

    return run


def guided_attention_l1_loss(logits, labels, attention_weights_flat, lengths,
                             params, *, alpha, beta, max_std=1000.0, min_std=1.0):
    """Forward pass of GuidedAttentionL1Loss.

    `attention_weights_flat` is the 1-D concatenation of the per-sample segments
    (the torch module torch.split's it); `lengths` must be a static python
    list/tuple of ints mirroring torch.split(attention_weights, lengths).
    """
    B, C = logits.shape
    lengths_t = tuple(int(l) for l in lengths)
    assert len(lengths_t) == B
    assert int(attention_weights_flat.shape[0]) == sum(lengths_t)
    run = _build_loss_fn(lengths_t, int(C), float(alpha), float(beta),
                         float(min_std), float(max_std))
    return run(logits, labels, attention_weights_flat, params)


if __name__ == "__main__":
    key = jax.random.PRNGKey(0)
    k1, k2, k3, k4 = jax.random.split(key, 4)

    B, C = 8, 16                        # 8 samples, 16 classes
    lengths = [12, 16, 10, 16, 8, 14, 16, 9]
    total_len = sum(lengths)
    P = 128                             # flat parameter vector size

    logits = jax.random.normal(k1, (B, C), dtype=jnp.float32)
    labels = jax.random.randint(k2, (B,), 0, 2, dtype=jnp.int32)   # binary labels (0/1)
    # positive attention weights, per-sample segments concatenated flat (as in PyTorch)
    attention_weights_flat = jax.nn.softmax(
        jax.random.normal(k3, (total_len,), dtype=jnp.float32))
    params = jax.random.normal(k4, (P,), dtype=jnp.float32)

    out = guided_attention_l1_loss(
        logits, labels, attention_weights_flat, lengths, params,
        alpha=0.01, beta=0.1, max_std=1000.0, min_std=1.0)

    jax.block_until_ready(out["loss"])
    jax.block_until_ready(out["nll"])
    print("KERNEL_OK")
</pallas_src>

<mosaic_0001>
module attributes {stable_mosaic.version = 11 : i64} {
  func.func @_guided_attention_l1_kernel(%arg0: memref<8x128xf32, #tpu.memory_space<vmem>>, %arg1: memref<1x256xf32, #tpu.memory_space<vmem>>, %arg2: memref<1x2xf32, #tpu.memory_space<smem>>) attributes {dimension_semantics = [], scalar_prefetch = 0 : i64, scratch_operands = 0 : i64, tpu.core_type = #tpu.core_type<tc>} {
    %c0 = arith.constant 0 : index
    %c0_0 = arith.constant 0 : index
    %0 = vector.load %arg0[%c0, %c0_0] : memref<8x128xf32, #tpu.memory_space<vmem>>, vector<8x128xf32>
    %1 = tpu.iota {dimensions = array<i32: 1>} : vector<8x128xi32>
    %2 = tpu.iota {dimensions = array<i32: 1>} : vector<8x128xi32>
    %c16_i32 = arith.constant 16 : i32
    %3 = vector.broadcast %c16_i32 : i32 to vector<8x128xi32>
    %4 = arith.cmpi eq, %1, %3 : vector<8x128xi32>
    %cst = arith.constant 0.000000e+00 : f32
    %5 = vector.broadcast %cst : f32 to vector<8x128xf32>
    %6 = arith.select %4, %0, %5 : vector<8x128xi1>, vector<8x128xf32>
    %cst_1 = arith.constant dense<0.000000e+00> : vector<8xf32>
    %7 = vector.multi_reduction <add>, %6, %cst_1 [1] : vector<8x128xf32> to vector<8xf32>
    %8 = vector.shape_cast %7 : vector<8xf32> to vector<8x1xf32>
    %c17_i32 = arith.constant 17 : i32
    %9 = vector.broadcast %c17_i32 : i32 to vector<8x128xi32>
    %10 = arith.cmpi eq, %1, %9 : vector<8x128xi32>
    %cst_2 = arith.constant 0.000000e+00 : f32
    %11 = vector.broadcast %cst_2 : f32 to vector<8x128xf32>
    %12 = arith.select %10, %0, %11 : vector<8x128xi1>, vector<8x128xf32>
    %cst_3 = arith.constant dense<0.000000e+00> : vector<8xf32>
    %13 = vector.multi_reduction <add>, %12, %cst_3 [1] : vector<8x128xf32> to vector<8xf32>
    %14 = vector.shape_cast %13 : vector<8xf32> to vector<8x1xf32>
    %c18_i32 = arith.constant 18 : i32
    %15 = vector.broadcast %c18_i32 : i32 to vector<8x128xi32>
    %16 = arith.cmpi eq, %1, %15 : vector<8x128xi32>
    %cst_4 = arith.constant 0.000000e+00 : f32
    %17 = vector.broadcast %cst_4 : f32 to vector<8x128xf32>
    %18 = arith.select %16, %0, %17 : vector<8x128xi1>, vector<8x128xf32>
    %cst_5 = arith.constant dense<0.000000e+00> : vector<8xf32>
    %19 = vector.multi_reduction <add>, %18, %cst_5 [1] : vector<8x128xf32> to vector<8xf32>
    %20 = vector.shape_cast %19 : vector<8xf32> to vector<8x1xf32>
    %c19_i32 = arith.constant 19 : i32
    %21 = vector.broadcast %c19_i32 : i32 to vector<8x128xi32>
    %22 = arith.cmpi eq, %1, %21 : vector<8x128xi32>
    %cst_6 = arith.constant 0.000000e+00 : f32
    %23 = vector.broadcast %cst_6 : f32 to vector<8x128xf32>
    %24 = arith.select %22, %0, %23 : vector<8x128xi1>, vector<8x128xf32>
    %cst_7 = arith.constant dense<0.000000e+00> : vector<8xf32>
    %25 = vector.multi_reduction <add>, %24, %cst_7 [1] : vector<8x128xf32> to vector<8xf32>
    %26 = vector.shape_cast %25 : vector<8xf32> to vector<8x1xf32>
    %c16_i32_8 = arith.constant 16 : i32
    %27 = vector.broadcast %c16_i32_8 : i32 to vector<8x128xi32>
    %28 = arith.cmpi slt, %1, %27 : vector<8x128xi32>
    %cst_9 = arith.constant -1.000000e+30 : f32
    %29 = vector.broadcast %cst_9 : f32 to vector<8x128xf32>
    %30 = arith.select %28, %0, %29 : vector<8x128xi1>, vector<8x128xf32>
    %cst_10 = arith.constant dense<0xFF800000> : vector<8xf32>
    %31 = vector.multi_reduction <maximumf>, %30, %cst_10 [1] : vector<8x128xf32> to vector<8xf32>
    %32 = vector.shape_cast %31 : vector<8xf32> to vector<8x1xf32>
    %33 = vector.broadcast %32 : vector<8x1xf32> to vector<8x128xf32>
    %34 = arith.subf %30, %33 : vector<8x128xf32>
    %35 = math.exp %34 : vector<8x128xf32>
    %cst_11 = arith.constant dense<0.000000e+00> : vector<8xf32>
    %36 = vector.multi_reduction <add>, %35, %cst_11 [1] : vector<8x128xf32> to vector<8xf32>
    %37 = vector.shape_cast %36 : vector<8xf32> to vector<8x1xf32>
    %38 = math.log %37 : vector<8x1xf32>
    %39 = arith.sitofp %1 : vector<8x128xi32> to vector<8x128xf32>
    %40 = vector.broadcast %8 : vector<8x1xf32> to vector<8x128xf32>
    %41 = arith.cmpf oeq, %39, %40 : vector<8x128xf32>
    %42 = arith.extui %41 : vector<8x128xi1> to vector<8x128xi32>
    %43 = arith.sitofp %42 : vector<8x128xi32> to vector<8x128xf32>
    %44 = arith.mulf %43, %34 : vector<8x128xf32>
    %cst_12 = arith.constant dense<0.000000e+00> : vector<8xf32>
    %45 = vector.multi_reduction <add>, %44, %cst_12 [1] : vector<8x128xf32> to vector<8xf32>
    %46 = vector.shape_cast %45 : vector<8xf32> to vector<8x1xf32>
    %47 = arith.subf %38, %46 : vector<8x1xf32>
    %48 = vector.shape_cast %47 : vector<8x1xf32> to vector<1x8x1xf32>
    %cst_13 = arith.constant dense<0.000000e+00> : vector<1xf32>
    %49 = vector.multi_reduction <add>, %48, %cst_13 [1, 2] : vector<1x8x1xf32> to vector<1xf32>
    %50 = vector.shape_cast %49 : vector<1xf32> to vector<1x1x1xf32>
    %51 = vector.extract %50[0, 0, 0] : f32 from vector<1x1x1xf32>
    %cst_14 = arith.constant 8.000000e+00 : f32
    %52 = arith.divf %51, %cst_14 : f32
    %c0_15 = arith.constant 0 : index
    %c0_16 = arith.constant 0 : index
    %53 = vector.load %arg1[%c0_15, %c0_16] : memref<1x256xf32, #tpu.memory_space<vmem>>, vector<1x128xf32>
    %c0_17 = arith.constant 0 : index
    %c12 = arith.constant 12 : index
    %54 = vector.load %arg1[%c0_17, %c12] : memref<1x256xf32, #tpu.memory_space<vmem>>, vector<1x128xf32>
    %c0_18 = arith.constant 0 : index
    %c28 = arith.constant 28 : index
    %55 = vector.load %arg1[%c0_18, %c28] : memref<1x256xf32, #tpu.memory_space<vmem>>, vector<1x128xf32>
    %c0_19 = arith.constant 0 : index
    %c38 = arith.constant 38 : index
    %56 = vector.load %arg1[%c0_19, %c38] : memref<1x256xf32, #tpu.memory_space<vmem>>, vector<1x128xf32>
    %c0_20 = arith.constant 0 : index
    %c54 = arith.constant 54 : index
    %57 = vector.load %arg1[%c0_20, %c54] : memref<1x256xf32, #tpu.memory_space<vmem>>, vector<1x128xf32>
    %c0_21 = arith.constant 0 : index
    %c62 = arith.constant 62 : index
    %58 = vector.load %arg1[%c0_21, %c62] : memref<1x256xf32, #tpu.memory_space<vmem>>, vector<1x128xf32>
    %c0_22 = arith.constant 0 : index
    %c76 = arith.constant 76 : index
    %59 = vector.load %arg1[%c0_22, %c76] : memref<1x256xf32, #tpu.memory_space<vmem>>, vector<1x128xf32>
    %c0_23 = arith.constant 0 : index
    %c92 = arith.constant 92 : index
    %60 = vector.load %arg1[%c0_23, %c92] : memref<1x256xf32, #tpu.memory_space<vmem>>, vector<1x128xf32>
    %61 = tpu.concatenate %53, %54, %55, %56, %57, %58, %59, %60 in 0 : vector<1x128xf32>, vector<1x128xf32>, vector<1x128xf32>, vector<1x128xf32>, vector<1x128xf32>, vector<1x128xf32>, vector<1x128xf32>, vector<1x128xf32> -> vector<8x128xf32>
    %62 = arith.sitofp %2 : vector<8x128xi32> to vector<8x128xf32>
    %63 = vector.broadcast %20 : vector<8x1xf32> to vector<8x128xf32>
    %64 = arith.cmpf olt, %62, %63 : vector<8x128xf32>
    %cst_24 = arith.constant 0.000000e+00 : f32
    %65 = vector.broadcast %cst_24 : f32 to vector<8x128xf32>
    %66 = arith.select %64, %61, %65 : vector<8x128xi1>, vector<8x128xf32>
    %cst_25 = arith.constant 1.000000e+00 : f32
    %67 = vector.broadcast %cst_25 : f32 to vector<8x128xf32>
    %68 = arith.addf %62, %67 : vector<8x128xf32>
    %69 = vector.broadcast %26 : vector<8x1xf32> to vector<8x128xf32>
    %70 = arith.mulf %68, %69 : vector<8x128xf32>
    %cst_26 = arith.constant dense<0.000000e+00> : vector<8xf32>
    %71 = vector.multi_reduction <add>, %66, %cst_26 [1] : vector<8x128xf32> to vector<8xf32>
    %72 = vector.shape_cast %71 : vector<8xf32> to vector<8x1xf32>
    %73 = arith.mulf %70, %66 : vector<8x128xf32>
    %cst_27 = arith.constant dense<0.000000e+00> : vector<8xf32>
    %74 = vector.multi_reduction <add>, %73, %cst_27 [1] : vector<8x128xf32> to vector<8xf32>
    %75 = vector.shape_cast %74 : vector<8xf32> to vector<8x1xf32>
    %76 = arith.divf %75, %72 : vector<8x1xf32>
    %cst_28 = arith.constant 1.000000e+00 : f32
    %77 = vector.broadcast %cst_28 : f32 to vector<8x1xf32>
    %78 = arith.cmpf oeq, %8, %77 : vector<8x1xf32>
    %cst_29 = arith.constant 1.000000e+00 : f32
    %79 = vector.broadcast %cst_29 : f32 to vector<8x1xf32>
    %80 = arith.mulf %20, %79 : vector<8x1xf32>
    %cst_30 = arith.constant 1.000000e-03 : f32
    %81 = vector.broadcast %cst_30 : f32 to vector<8x1xf32>
    %82 = arith.mulf %20, %81 : vector<8x1xf32>
    %83 = arith.select %78, %80, %82 : vector<8x1xi1>, vector<8x1xf32>
    %cst_31 = arith.constant 0.398942292 : f32
    %84 = vector.broadcast %cst_31 : f32 to vector<8x1xf32>
    %85 = arith.mulf %83, %84 : vector<8x1xf32>
    %86 = vector.broadcast %76 : vector<8x1xf32> to vector<8x128xf32>
    %87 = arith.subf %70, %86 : vector<8x128xf32>
    %88 = vector.broadcast %83 : vector<8x1xf32> to vector<8x128xf32>
    %89 = arith.mulf %87, %88 : vector<8x128xf32>
    %cst_32 = arith.constant -5.000000e-01 : f32
    %90 = vector.broadcast %cst_32 : f32 to vector<8x128xf32>
    %91 = arith.mulf %90, %89 : vector<8x128xf32>
    %92 = arith.mulf %91, %89 : vector<8x128xf32>
    %93 = math.exp %92 : vector<8x128xf32>
    %94 = vector.broadcast %85 : vector<8x1xf32> to vector<8x128xf32>
    %95 = arith.mulf %94, %93 : vector<8x128xf32>
    %cst_33 = arith.constant 0.000000e+00 : f32
    %96 = vector.broadcast %cst_33 : f32 to vector<8x128xf32>
    %97 = arith.select %64, %95, %96 : vector<8x128xi1>, vector<8x128xf32>
    %cst_34 = arith.constant dense<0.000000e+00> : vector<8xf32>
    %98 = vector.multi_reduction <add>, %97, %cst_34 [1] : vector<8x128xf32> to vector<8xf32>
    %99 = vector.shape_cast %98 : vector<8xf32> to vector<8x1xf32>
    %cst_35 = arith.constant 9.99999997E-7 : f32
    %100 = vector.broadcast %cst_35 : f32 to vector<8x1xf32>
    %101 = arith.addf %99, %100 : vector<8x1xf32>
    %cst_36 = arith.constant 1.000000e+00 : f32
    %102 = vector.broadcast %cst_36 : f32 to vector<8x1xf32>
    %103 = arith.divf %102, %101 : vector<8x1xf32>
    %104 = vector.broadcast %103 : vector<8x1xf32> to vector<8x128xf32>
    %105 = arith.mulf %97, %104 : vector<8x128xf32>
    %106 = arith.subf %66, %105 : vector<8x128xf32>
    %107 = arith.mulf %106, %106 : vector<8x128xf32>
    %cst_37 = arith.constant dense<0.000000e+00> : vector<8xf32>
    %108 = vector.multi_reduction <add>, %107, %cst_37 [1] : vector<8x128xf32> to vector<8xf32>
    %109 = vector.shape_cast %108 : vector<8xf32> to vector<8x1xf32>
    %110 = arith.mulf %109, %26 : vector<8x1xf32>
    %111 = vector.shape_cast %110 : vector<8x1xf32> to vector<1x8x1xf32>
    %cst_38 = arith.constant dense<0.000000e+00> : vector<1xf32>
    %112 = vector.multi_reduction <add>, %111, %cst_38 [1, 2] : vector<1x8x1xf32> to vector<1xf32>
    %113 = vector.shape_cast %112 : vector<1xf32> to vector<1x1x1xf32>
    %114 = vector.extract %113[0, 0, 0] : f32 from vector<1x1x1xf32>
    %cst_39 = arith.constant 8.000000e+00 : f32
    %115 = arith.divf %114, %cst_39 : f32
    %cst_40 = arith.constant 5.000000e-02 : f32
    %116 = arith.mulf %cst_40, %115 : f32
    %117 = vector.shape_cast %14 : vector<8x1xf32> to vector<1x8x1xf32>
    %cst_41 = arith.constant dense<0.000000e+00> : vector<1xf32>
    %118 = vector.multi_reduction <add>, %117, %cst_41 [1, 2] : vector<1x8x1xf32> to vector<1xf32>
    %119 = vector.shape_cast %118 : vector<1xf32> to vector<1x1x1xf32>
    %120 = vector.extract %119[0, 0, 0] : f32 from vector<1x1x1xf32>
    %cst_42 = arith.constant 8.000000e+00 : f32
    %121 = arith.divf %120, %cst_42 : f32
    %122 = arith.addf %52, %121 : f32
    %123 = arith.addf %122, %116 : f32
    %c0_43 = arith.constant 0 : index
    %c0_44 = arith.constant 0 : index
    %124 = memref.load %arg2[%c0_43, %c0_44] : memref<1x2xf32, #tpu.memory_space<smem>>
    memref.store %123, %arg2[%c0_43, %c0_44] : memref<1x2xf32, #tpu.memory_space<smem>>
    %c0_45 = arith.constant 0 : index
    %c1 = arith.constant 1 : index
    %125 = memref.load %arg2[%c0_45, %c1] : memref<1x2xf32, #tpu.memory_space<smem>>
    memref.store %52, %arg2[%c0_45, %c1] : memref<1x2xf32, #tpu.memory_space<smem>>
    return
  }
}

</mosaic_0001>

<bundles_post_ra>
// kernel: run.1
= control target key start
LH: loop header
LB: loop body
LE: loop exit
PB: predicated region body
PF: predicated region fallthrough
CT: control target
= control target key end

     0   :  { %v13_v0 = vlaneseq  ;;  %s324_s0 = inlined_call_operand.vmem [shape: f32[8,128], index: 0, kind: input, shape index: {}]   ;;  %s325_s1 = inlined_call_operand.vmem [shape: f32[1,256], index: 1, kind: input, shape index: {}]   ;;  %s326_s2 = inlined_call_operand.vmem [shape: f32[1,2], index: 2, kind: output, shape index: {}]  }
   0x1   :  { %7 = vsyncpa [#allocation3], 0  ;;  %v287_v1 = vld [vmem:[%s324_s0] sm:$0xff]  ;;  %s260_s13 = smov 116   ;;  %s261_s0 = smov 100   ;;  %vm79_vm2 = vcmask 949248  }
   0x2   :  { %v289_v2 = vand.u32 127, %v13_v0  ;;  %v68_v3 = vshrl.u32 %v13_v0, 7  ;;  %v65_v4 = vld [vmem:[%s325_s1] sm:$0x3]  ;;  %s262_s14 = smov 90   ;;  %s263_s15 = smov 74  }
   0x3   :  { %s264_s16 = smov 66   ;;  %s265_s17 = smov 52   ;;  %v64_v23 = vld [vmem:[%s325_s1] sm:$0x1]  ;;  %vm124_vm3 = vcmask 1040384   ;;  %vm93_vm4 = vcmask 736256  }
   0x4   :  { %vm23_vm0 = vcmp.eq.s32.totalorder %v289_v2, 18  ;;  %v69_v5 = vsub.s32 0, %v68_v3  ;;  %v73_v6 = vsub.s32 1, %v68_v3  ;;  %vm27_vm1 = vcmp.eq.s32.totalorder %v289_v2, 19  ;;  %s266_s18 = smov 36   ;;  %s211_s28 = sshll.u32 %s326_s2, 4  ;;  %s212_s28 = int_to_ptr.vmem [resolvable:$true] %s211_s28 }
   0x5   :  { %v24_v7 = vsel %vm23_vm0, %v287_v1, 0.0  ;;  %v28_v10 = vsel %vm27_vm1, %v287_v1, 0.0  ;;  %vm86_vm5 = vcmask 818176   ;;  %vm100_vm6 = vcmask 605184   ;;  %s246_s4 = scalar_lea.vmem %s212_s28, 16  ;;  %p251_p1 = scmp.lt.s32.totalorder %s212_s28, %s212_s28 }
   0x6   :  { %25 = vadd.xlane.f32.xlu0 %v24_v7  ;;  %v74_v8 = vrot.slane %v65_v4, %v73_v6  ;;  %v70_v9 = vrot.slane %v65_v4, %v69_v5  ;;  %vm126_vm7 = vcmask 1041408   ;;  %vm107_vm8 = vcmask 539648   ;;  %p247_p0 = scmp.ne.s32.totalorder %s212_s28, %s246_s4  ;;  %p252_p2 = scmp.lt.s32.totalorder %s246_s4, %s246_s4 }
   0x7   :  { %vm128_vm9 = vcmask 1042432   ;;  %vm130_vm10 = vcmask 1043456   ;;  %v42_v31 = vcvt.s32.f32 %v289_v2  ;;  %vm132_vm11 = vcmask 1044480  }
   0x8   :  { %77 = vrot.lane.b32.xlu1 %v74_v8, %s260_s13  ;;  %vm114_vm12 = vcmask 424960   ;;  %vm121_vm13 = vcmask 293888   ;;  %vm134_vm14 = vcmask 1045504   ;;  %vm136_vm15 = vcmask 1046528   ;;  %p253_p3 = por %p252_p2, %p251_p1 }
   0x9   :  { %v140_v35 = vadd.f32 1.0, %v42_v31  ;;  %vm15_vm1 = vcmp.eq.s32.totalorder %v289_v2, 16  ;;  %v267_v7 = vmov 0.0  }
   0xa   :  { %v16_v47 = vsel %vm15_vm1, %v287_v1, 0.0  ;;  %p254_p4 = pnand %p253_p3, %p247_p0 }
   0xc   :  { %82 = vrot.lane.b32.xlu1 %v70_v9, %s261_s0 }
  0x10   :  { %84 = vrot.lane.b32.xlu1 %v74_v8, %s261_s0 }
  0x1c   :  { %75 = vrot.lane.b32.xlu0 %v70_v9, %s260_s13 }
  0x20   :  { %89 = vrot.lane.b32.xlu0 %v70_v9, %s262_s14 }
  0x24   :  { %91 = vrot.lane.b32.xlu0 %v74_v8, %s262_s14 }
  0x28   :  { %96 = vrot.lane.b32.xlu0 %v70_v9, %s263_s15 }
  0x2c   :  { %98 = vrot.lane.b32.xlu0 %v74_v8, %s263_s15 }
  0x30   :  { %103 = vrot.lane.b32.xlu0 %v70_v9, %s264_s16 }
  0x34   :  { %29 = vadd.xlane.f32.xlu1 %v28_v10  ;;  %105 = vrot.lane.b32.xlu0 %v74_v8, %s264_s16 }
  0x38   :  { %112 = vrot.lane.b32.xlu0 %v74_v8, %s265_s17 }
  0x3c   :  { %117 = vrot.lane.b32.xlu0 %v70_v9, %s266_s18 }
  0x40   :  { %119 = vrot.lane.b32.xlu0 %v74_v8, %s266_s18 }
  0x45   :  { %110 = vrot.lane.b32.xlu1 %v70_v9, %s265_s17 }
  0x7a   :  { %v78_v18 = vpop.permute.xlu1 %77 }
  0x7e   :  { %v83_v20 = vpop.permute.xlu1 %82 }
  0x82   :  { %v85_v22 = vpop.permute.xlu1 %84 }
  0x83   :  { %v87_v29 = vsel %vm86_vm5, %v83_v20, %v85_v22  ;;  %vm19_vm5 = vcmp.eq.s32.totalorder %v289_v2, 17 }
  0x84   :  { %v20_v10 = vsel %vm19_vm5, %v287_v1, 0.0 }
  0x93   :  { %v298_v11 = vpop.xlane.xlu0 %25 }
  0x94   :  { %vm138_vm0 = vcmp.lt.f32.partialorder %v42_v31, %v298_v11  ;;  %v150_v57 = vmul.f32 0.001, %v298_v11 }
  0x97   :  { %v76_v12 = vpop.permute.xlu0 %75 }
  0x98   :  { %v80_v24 = vsel %vm79_vm2, %v76_v12, %v78_v18  ;;  %vm31_vm2 = vcmp.lt.s32.totalorder %v289_v2, 16 }
  0x99   :  { %v125_v26 = vsel %vm124_vm3, %v64_v23, %v80_v24  ;;  %v32_v48 = vsel %vm31_vm2, %v287_v1, -1e+30 }
  0x9a   :  { %v127_v32 = vsel %vm126_vm7, %v125_v26, %v87_v29 }
  0x9b   :  { %v90_v13 = vpop.permute.xlu0 %89 }
  0x9f   :  { %v92_v14 = vpop.permute.xlu0 %91 }
  0xa0   :  { %v94_v27 = vsel %vm93_vm4, %v90_v13, %v92_v14 }
  0xa1   :  { %v129_v34 = vsel %vm128_vm9, %v127_v32, %v94_v27 }
  0xa3   :  { %v97_v15 = vpop.permute.xlu0 %96 }
  0xa7   :  { %v99_v16 = vpop.permute.xlu0 %98 }
  0xa8   :  { %v101_v30 = vsel %vm100_vm6, %v97_v15, %v99_v16  ;;  %vm50_vm6 = vcmask 7168  }
  0xa9   :  { %v131_v37 = vsel %vm130_vm10, %v129_v34, %v101_v30 }
  0xab   :  { %v104_v17 = vpop.permute.xlu0 %103 }
  0xaf   :  { %v106_v19 = vpop.permute.xlu0 %105 }
  0xb0   :  { %v108_v33 = vsel %vm107_vm8, %v104_v17, %v106_v19 }
  0xb1   :  { %v133_v39 = vsel %vm132_vm11, %v131_v37, %v108_v33 }
  0xb3   :  { %v113_v21 = vpop.permute.xlu0 %112 }
  0xb7   :  { %v118_v25 = vpop.permute.xlu0 %117 }
  0xbb   :  { %v120_v36 = vpop.permute.xlu0 %119 }
  0xbc   :  { %v122_v41 = vsel %vm121_vm13, %v118_v25, %v120_v36 }
  0xc1   :  { %v303_v28 = vpop.xlane.xlu1 %29 }
  0xc2   :  { %v141_v43 = vmul.f32 %v140_v35, %v303_v28 }
  0xc5   :  { %v111_v38 = vpop.permute.xlu1 %110 }
  0xc6   :  { %v115_v40 = vsel %vm114_vm12, %v111_v38, %v113_v21 }
  0xc7   :  { %v135_v42 = vsel %vm134_vm14, %v133_v39, %v115_v40 }
  0xc8   :  { %v137_v44 = vsel %vm136_vm15, %v135_v42, %v122_v41 }
  0xc9   :  { %v139_v45 = vsel %vm138_vm0, %v137_v44, 0.0 }
  0xca   :  { %142 = vadd.xlane.f32.xlu0 %v139_v45  ;;  %v144_v46 = vmul.f32 %v141_v43, %v139_v45 }
  0xcc   :  { %145 = vadd.xlane.f32.xlu1 %v144_v46 }
  0xce   :  { %17 = vadd.xlane.f32.xlu0 %v16_v47 }
  0xd2   :  { %33 = vmax.xlane.f32.xlu0 %v32_v48 }
 0x157   :  { %v143_v49 = vpop.xlane.xlu0 %142 }
 0x158   :  { %236 = vrcp.f32 %v143_v49 }
 0x159   :  { %v146_v54 = vpop.xlane.xlu1 %145 }
 0x15b   :  { %v18_v50 = vpop.xlane.xlu0 %17 }
 0x15c   :  { %vm149_vm3 = vcmp.eq.f32.partialorder %v18_v50, 1.0  ;;  %vm43_vm4 = vcmp.eq.f32.partialorder %v42_v31, %v18_v50 }
 0x15d   :  { %v151_v59 = vsel %vm149_vm3, %v298_v11, %v150_v57  ;;  %v220_v8 = vsel %vm43_vm4, 1.0, %v267_v7 }
 0x15e   :  { %v152_v3 = vmul.f32 0.3989423, %v151_v59 }
 0x15f   :  { %v34_v51 = vpop.xlane.xlu0 %33 }
 0x160   :  { %v35_v52 = vsub.f32 %v32_v48, %v34_v51 }
 0x162   :  { %v237_v53 = vpop.eup %236  ;;  %v36_v55 = vmul.f32 1.442695, %v35_v52  ;;  %v46_v9 = vmul.f32 %v220_v8, %v35_v52 }
 0x163   :  { %v148_v56 = vmul.f32 %v237_v53, %v146_v54 }
 0x164   :  { %238 = vpow2.f32 %v36_v55 }
 0x165   :  { %v153_v58 = vsub.f32 %v141_v43, %v148_v56 }
 0x167   :  { %v154_v60 = vmul.f32 %v153_v58, %v151_v59 }
 0x169   :  { %v155_v61 = vmul.f32 -0.5, %v154_v60 }
 0x16b   :  { %v156_v62 = vmul.f32 %v155_v61, %v154_v60 }
 0x16d   :  { %v157_v63 = vmul.f32 1.442695, %v156_v62 }
 0x16e   :  { %v239_v0 = vpop.eup %238 }
 0x16f   :  { %240 = vpow2.f32 %v157_v63  ;;  %38 = vadd.xlane.f32.xlu1 %v239_v0 }
 0x179   :  { %v241_v4 = vpop.eup %240 }
 0x17a   :  { %v159_v5 = vmul.f32 %v241_v4, %v152_v3 }
 0x17c   :  { %v160_v6 = vsel %vm138_vm0, %v159_v5, 0.0 }
 0x17d   :  { %161 = vadd.xlane.f32.xlu0 %v160_v6 }
 0x181   :  { %47 = vadd.xlane.f32.xlu0 %v46_v9 }
 0x185   :  { %21 = vadd.xlane.f32.xlu0 %v20_v10 }
 0x1fc   :  { %v39_v12 = vpop.xlane.xlu1 %38 }
 0x1fd   :  { %242 = vlog2.f32 %v39_v12 }
 0x207   :  { %v243_v15 = vpop.eup %242 }
 0x208   :  { %v41_v11 = vmul.f32 0.6931472, %v243_v15 }
 0x20a   :  { %v162_v13 = vpop.xlane.xlu0 %161 }
 0x20b   :  { %v163_v14 = vadd.f32 1e-06, %v162_v13 }
 0x20d   :  { %244 = vrcp.f32 %v163_v14 }
 0x20e   :  { %v48_v18 = vpop.xlane.xlu0 %47 }
 0x20f   :  { %v49_v21 = vsub.f32 %v41_v11, %v48_v18 }
 0x211   :  { %v51_v2 = vsel %vm50_vm6, %v49_v21, 0.0 }
 0x212   :  { %v22_v22 = vpop.xlane.xlu0 %21 }
 0x213   :  { %v186_v1 = vsel %vm50_vm6, %v22_v22, 0.0 }
 0x217   :  { %v245_v16 = vpop.eup %244 }
 0x218   :  { %v166_v17 = vmul.f32 %v245_v16, %v160_v6 }
 0x21a   :  { %v167_v19 = vsub.f32 %v139_v45, %v166_v17 }
 0x21c   :  { %v168_v20 = vmul.f32 %v167_v19, %v167_v19 }
 0x21e   :  { %169 = vadd.xlane.f32.xlu1 %v168_v20 }
 0x222   :  { %52 = vadd.xlane.f32.xlu1 %v51_v2 }
 0x226   :  { %187 = vadd.xlane.f32.xlu1 %v186_v1 }
 0x2ab   :  { %v170_v23 = vpop.xlane.xlu1 %169 }
 0x2ac   :  { %v171_v24 = vmul.f32 %v170_v23, %v303_v28 }
 0x2ae   :  { %v172_v25 = vsel %vm50_vm6, %v171_v24, 0.0 }
 0x2af   :  { %173 = vadd.xlane.f32.xlu0 %v172_v25  ;;  %v53_v26 = vpop.xlane.xlu1 %52 }
 0x2b0   :  { %v54_v27 = vrot.slane %v53_v26, 4 }
 0x2b2   :  { %v55_v29 = vadd.f32 %v54_v27, %v53_v26 }
 0x2b3   :  { %v188_v34 = vpop.xlane.xlu1 %187 }
 0x2b4   :  { %v56_v30 = vrot.slane %v55_v29, 2  ;;  %v189_v35 = vrot.slane %v188_v34, 4 }
 0x2b6   :  { %v57_v31 = vadd.f32 %v56_v30, %v55_v29  ;;  %v190_v36 = vadd.f32 %v189_v35, %v188_v34 }
 0x2b8   :  { %v58_v32 = vrot.slane %v57_v31, 1  ;;  %v191_v37 = vrot.slane %v190_v36, 2 }
 0x2ba   :  { %v59_v33 = vadd.f32 %v58_v32, %v57_v31  ;;  %v192_v40 = vadd.f32 %v191_v37, %v190_v36 }
 0x2bc   :  { %221 = vpush %v59_v33  ;;  %v193_v43 = vrot.slane %v192_v40, 1 }
 0x2be   :  { %v194_v46 = vadd.f32 %v193_v43, %v192_v40 }
 0x2ed   :  { %s222_s1 = spop %221 }
 0x2ee   :  { %s63_s21 = smul.f32 0.125, %s222_s1 }
 0x2f0   :  { %204 = sst [smem:[#allocation2 + $0x1]] %s63_s21 }
 0x33c   :  { %v174_v38 = vpop.xlane.xlu0 %173 }
 0x33d   :  { %v175_v39 = vrot.slane %v174_v38, 4 }
 0x33f   :  { %v176_v28 = vadd.f32 %v175_v39, %v174_v38 }
 0x341   :  { %v177_v41 = vrot.slane %v176_v28, 2 }
 0x343   :  { %v178_v42 = vadd.f32 %v177_v41, %v176_v28 }
 0x345   :  { %v179_v44 = vrot.slane %v178_v42, 1 }
 0x347   :  { %v180_v45 = vadd.f32 %v179_v44, %v178_v42 }
 0x349   :  { %223 = vpush %v180_v45 }
 0x34a   :  { %225 = vpush %v194_v46 }
 0x37a   :  { %s224_s22 = spop %223 }
 0x37b   :  { %s184_s23 = smul.f32 0.125, %s224_s22  ;;  %s226_s24 = spop %225 }
 0x37c   :  { %s198_s25 = smul.f32 0.125, %s226_s24 }
 0x37d   :  { %s185_s29 = smul.f32 0.05, %s184_s23 }
 0x37e   :  { %s199_s30 = sadd.f32 %s198_s25, %s63_s21 }
 0x380   :  { %s200_s3 = sadd.f32 %s199_s30, %s185_s29 }
 0x382   :  { %202 = sst [smem:[#allocation2]] %s200_s3 }
 0x383   :  { %257 = shalt.err (!%p254_p4)
}
 0x384   :  { %s268_s5 = smov [#allocation2]  }
 0x385   :  { %214 = dma.smem_to_vmem %s268_s5, 16, %s212_s28, [#allocation3]  }
 0x386   :  { %258 = dma.done.wait [#allocation3], 16  }
 0x387   :  { %259 = vsyncadd [#allocation3], 4294967280 }
 0x388   :  { %218 = sfence }
 0x389   :  { %219 = vsyncpa [#allocation3], 1 }

</bundles_post_ra>
